<compile_context>
chip_gen: v6e
topology: v6e:2x2x1
jax: 0.10.0
libtpu: 0.0.40
codegen_flags: <defaults>
</compile_context>

<pallas_src>
import jax
import jax.numpy as jnp
import numpy as np
from jax.experimental import pallas as pl
from jax.experimental.pallas import tpu as pltpu

S_GRID = 7            # S
B_BOX = 2             # B
C_CLS = 20            # C
N_FEAT = 5 * B_BOX + C_CLS   # 30
L_COORD = 5.0
L_NOOBJ = 0.5

_SUB = 8              # sublanes per in-kernel compute chunk
_LANES = 128          # lane width (cells per sublane row)
_INV_S = 1.0 / float(S_GRID)
_TR_CAP = 64          # max sublane-tile per grid step (~0.94 MiB / input block)


def _round_up(x, n):
    return ((x + n - 1) // n) * n


def _yolo_loss_kernel(p_ref, t_ref, out_ref):
    """p_ref/t_ref: (N_FEAT, TR, 128) f32 blocks (features on axis 0, cells
    dense over sublanes x lanes).  out_ref: (1, 8, 128) f32; rows 0..4 hold
    per-lane partial sums of [xy, wh, obj, noobj, class]."""

    # Output block is resident across the reduction axis (axis 1 of the grid);
    # initialize once per output block.
    @pl.when(pl.program_id(1) == 0)
    def _init():
        out_ref[...] = jnp.zeros_like(out_ref)

    tr = p_ref.shape[1]
    n_chunks = tr // _SUB
    acc_shape = (_SUB, _LANES)

    a_xy = jnp.zeros(acc_shape, jnp.float32)
    a_wh = jnp.zeros(acc_shape, jnp.float32)
    a_obj = jnp.zeros(acc_shape, jnp.float32)
    a_noobj = jnp.zeros(acc_shape, jnp.float32)
    a_cls = jnp.zeros(acc_shape, jnp.float32)

    # Process the VMEM-resident tile in 8-sublane chunks to keep the live
    # working set (~30 feature planes + temporaries) within the vreg budget.
    for ci in range(n_chunks):
        r0 = ci * _SUB

        def pf(k):
            return p_ref[k, r0:r0 + _SUB, :]      # (8, 128) pred feature plane

        def tf(k):
            return t_ref[k, r0:r0 + _SUB, :]      # (8, 128) target feature plane

        tconf = tf(4)
        coord_mask = tconf > 0.0                   # cells containing an object
        noobj_mask = tconf == 0.0                  # empty cells (and padding)

        # Pred boxes 0 / 1, target box 0 geometry, target box-1 coords/conf.
        px0, py0, pw0, ph0, pc0 = pf(0), pf(1), pf(2), pf(3), pf(4)
        px1, py1, pw1, ph1, pc1 = pf(5), pf(6), pf(7), pf(8), pf(9)
        tx0, ty0, tw0, th0 = tf(0), tf(1), tf(2), tf(3)
        tx1, ty1, tw1, th1, tc1 = tf(5), tf(6), tf(7), tf(8), tf(9)

        def to_xyxy(x, y, w, h):
            cx = x * _INV_S
            cy = y * _INV_S
            return cx - 0.5 * w, cy - 0.5 * h, cx + 0.5 * w, cy + 0.5 * h

        ta_x1, ta_y1, ta_x2, ta_y2 = to_xyxy(tx0, ty0, tw0, th0)
        t_area = (ta_x2 - ta_x1) * (ta_y2 - ta_y1)

        def iou_vs_target(px, py, pw, ph):
            x1, y1, x2, y2 = to_xyxy(px, py, pw, ph)
            iw = jnp.maximum(jnp.minimum(x2, ta_x2) - jnp.maximum(x1, ta_x1), 0.0)
            ih = jnp.maximum(jnp.minimum(y2, ta_y2) - jnp.maximum(y1, ta_y1), 0.0)
            inter = iw * ih
            p_area = (x2 - x1) * (y2 - y1)
            union = p_area + t_area - inter
            # EUP approximate reciprocal + one Newton step: divide moves off
            # the VALU critical path while keeping ~f32 accuracy.  NaNs from
            # degenerate (padded / no-object) cells are masked out below.
            r = pl.reciprocal(union, approx=True)
            r = r * (2.0 - union * r)
            return inter * r

        iou0 = iou_vs_target(px0, py0, pw0, ph0)
        iou1 = iou_vs_target(px1, py1, pw1, ph1)

        use1 = iou1 > iou0                         # responsible box; ties -> box 0
        max_iou = jnp.where(use1, iou1, iou0)

        rpx = jnp.where(use1, px1, px0)
        rpy = jnp.where(use1, py1, py0)
        rpw = jnp.where(use1, pw1, pw0)
        rph = jnp.where(use1, ph1, ph0)
        rpc = jnp.where(use1, pc1, pc0)
        rtx = jnp.where(use1, tx1, tx0)
        rty = jnp.where(use1, ty1, ty0)
        rtw = jnp.where(use1, tw1, tw0)
        rth = jnp.where(use1, th1, th0)

        lxy = (rpx - rtx) ** 2 + (rpy - rty) ** 2
        lwh = ((jnp.sqrt(rpw) - jnp.sqrt(rtw)) ** 2
               + (jnp.sqrt(rph) - jnp.sqrt(rth)) ** 2)
        lobj = (rpc - max_iou) ** 2
        # Reference compares pred conf cols [4, 9] against target cols [4, 9].
        lnoobj = (pc0 - tconf) ** 2 + (pc1 - tc1) ** 2

        lcls = jnp.zeros(acc_shape, jnp.float32)
        for k in range(10, N_FEAT):
            d = pf(k) - tf(k)
            lcls = lcls + d * d

        zero = jnp.zeros(acc_shape, jnp.float32)
        a_xy = a_xy + jnp.where(coord_mask, lxy, zero)
        a_wh = a_wh + jnp.where(coord_mask, lwh, zero)
        a_obj = a_obj + jnp.where(coord_mask, lobj, zero)
        a_noobj = a_noobj + jnp.where(noobj_mask, lnoobj, zero)
        a_cls = a_cls + jnp.where(coord_mask, lcls, zero)

    # Sublane-reduce each accumulator to a lane-dense (1, 128) row and add it
    # into the resident output block (rows 0..4).
    out_ref[0, 0:1, :] += jnp.sum(a_xy, axis=0, keepdims=True)
    out_ref[0, 1:2, :] += jnp.sum(a_wh, axis=0, keepdims=True)
    out_ref[0, 2:3, :] += jnp.sum(a_obj, axis=0, keepdims=True)
    out_ref[0, 3:4, :] += jnp.sum(a_noobj, axis=0, keepdims=True)
    out_ref[0, 4:5, :] += jnp.sum(a_cls, axis=0, keepdims=True)


def yolo_v1_loss(pred, target):
    """pred, target: [batch, S, S, 30].  Returns the same 5-tuple as
    Loss_yolov1.forward: (loss, loss_xy+loss_wh, loss_obj, loss_noobj, loss_class)."""
    batch = pred.shape[0]
    m = batch * S_GRID * S_GRID

    # --- tiling of the cell axis -------------------------------------------
    r = pl.cdiv(m, _LANES)                         # sublane rows of cells
    tr = min(_TR_CAP, _round_up(r, _SUB))          # sublane tile per grid step
    n_tiles = pl.cdiv(r, tr)
    nsplit = 2 if n_tiles >= 4 else 1              # 2-way split (helps v7x dual-TC)
    n_tiles = _round_up(n_tiles, nsplit)
    steps = n_tiles // nsplit
    r_pad = n_tiles * tr
    m_pad = r_pad * _LANES

    # --- feature-major, lane-dense layout: (30, r_pad, 128) -----------------
    # Padded cells are all-zero: conf==0 -> noobj with zero error -> 0 loss.
    p2 = pred.reshape(m, N_FEAT).astype(jnp.float32)
    t2 = target.reshape(m, N_FEAT).astype(jnp.float32)
    if m_pad != m:
        pad = ((0, m_pad - m), (0, 0))
        p2 = jnp.pad(p2, pad)
        t2 = jnp.pad(t2, pad)
    p3 = p2.T.reshape(N_FEAT, r_pad, _LANES)
    t3 = t2.T.reshape(N_FEAT, r_pad, _LANES)

    in_spec = pl.BlockSpec((N_FEAT, tr, _LANES),
                           lambda c, s: (0, c * steps + s, 0))
    out_spec = pl.BlockSpec((1, 8, _LANES), lambda c, s: (c, 0, 0))

    out = pl.pallas_call(
        _yolo_loss_kernel,
        out_shape=jax.ShapeDtypeStruct((nsplit, 8, _LANES), jnp.float32),
        grid=(nsplit, steps),
        in_specs=[in_spec, in_spec],
        out_specs=out_spec,
        compiler_params=pltpu.CompilerParams(
            dimension_semantics=("parallel", "arbitrary")),
    )(p3, t3)

    sums = jnp.sum(out, axis=(0, 2))               # (8,) -> 5 used lanes
    loss_xy, loss_wh, loss_obj = sums[0], sums[1], sums[2]
    loss_noobj, loss_class = sums[3], sums[4]
    loss = (L_COORD * (loss_xy + loss_wh) + loss_obj
            + L_NOOBJ * loss_noobj + loss_class) / float(batch)
    return loss, loss_xy + loss_wh, loss_obj, loss_noobj, loss_class


def _ref_loss_np(pred, target, S=S_GRID, B=B_BOX):
    """Pure-numpy transliteration of Loss_yolov1.forward (for verification)."""
    pred = np.asarray(pred, np.float32)
    target = np.asarray(target, np.float32)
    bs = pred.shape[0]
    n = N_FEAT
    p = pred.reshape(-1, n)
    t = target.reshape(-1, n)
    coord = t[:, 4] > 0
    noobj = t[:, 4] == 0
    cp, ct = p[coord], t[coord]
    npred, ntarg = p[noobj], t[noobj]
    loss_noobj = float(((npred[:, [4, 9]] - ntarg[:, [4, 9]]) ** 2).sum())

    bbox_pred = cp[:, :5 * B].reshape(-1, 5)
    bbox_targ = ct[:, :5 * B].reshape(-1, 5)
    loss_xy = loss_wh = loss_obj = 0.0
    for i in range(0, bbox_targ.shape[0], B):
        pb = bbox_pred[i:i + B]
        pxyxy = np.zeros((B, 4), np.float32)
        pxyxy[:, :2] = pb[:, :2] / S - 0.5 * pb[:, 2:4]
        pxyxy[:, 2:] = pb[:, :2] / S + 0.5 * pb[:, 2:4]
        tb = bbox_targ[i:i + 1]
        txyxy = np.zeros((1, 4), np.float32)
        txyxy[:, :2] = tb[:, :2] / S - 0.5 * tb[:, 2:4]
        txyxy[:, 2:] = tb[:, :2] / S + 0.5 * tb[:, 2:4]
        lt = np.maximum(pxyxy[:, None, :2], txyxy[None, :, :2])
        rb = np.minimum(pxyxy[:, None, 2:], txyxy[None, :, 2:])
        wh = np.clip(rb - lt, 0, None)
        inter = wh[..., 0] * wh[..., 1]
        a1 = ((pxyxy[:, 2] - pxyxy[:, 0]) * (pxyxy[:, 3] - pxyxy[:, 1]))[:, None]
        a2 = ((txyxy[:, 2] - txyxy[:, 0]) * (txyxy[:, 3] - txyxy[:, 1]))[None, :]
        iou = inter / (a1 + a2 - inter)
        j = int(iou[:, 0].argmax())
        max_iou = float(iou[j, 0])
        bp, bt = bbox_pred[i + j], bbox_targ[i + j]
        loss_xy += float(((bp[:2] - bt[:2]) ** 2).sum())
        loss_wh += float(((np.sqrt(bp[2:4]) - np.sqrt(bt[2:4])) ** 2).sum())
        loss_obj += float((bp[4] - max_iou) ** 2)
    loss_class = float(((cp[:, 10:] - ct[:, 10:]) ** 2).sum())
    loss = (L_COORD * (loss_xy + loss_wh) + loss_obj
            + L_NOOBJ * loss_noobj + loss_class) / float(bs)
    return loss, loss_xy + loss_wh, loss_obj, loss_noobj, loss_class


if __name__ == "__main__":
    key = jax.random.PRNGKey(0)
    k1, k2, k3 = jax.random.split(key, 3)
    batch = 2

    # Small deterministic inputs consistent with forward(): [batch, 7, 7, 30].
    pred = jax.random.uniform(k1, (batch, S_GRID, S_GRID, N_FEAT),
                              jnp.float32, 0.05, 0.95)
    target = jax.random.uniform(k2, (batch, S_GRID, S_GRID, N_FEAT),
                                jnp.float32, 0.05, 0.95)
    obj = jax.random.bernoulli(k3, 0.3, (batch, S_GRID, S_GRID)).astype(jnp.float32)
    target = target.at[..., 4].set(obj)
    target = target.at[..., 9].set(obj)

    loss_fn = jax.jit(yolo_v1_loss)
    outs = jax.block_until_ready(loss_fn(pred, target))
    ref = _ref_loss_np(np.asarray(pred), np.asarray(target))

    for got, want in zip(outs, ref):
        np.testing.assert_allclose(np.asarray(got), np.float32(want),
                                   rtol=1e-3, atol=1e-3)
    print("KERNEL_OK")
</pallas_src>

<mosaic_0001>
module attributes {stable_mosaic.version = 11 : i64} {
  func.func @_yolo_loss_kernel(%arg0: i32, %arg1: i32, %arg2: memref<30x8x128xf32, #tpu.memory_space<vmem>>, %arg3: memref<30x8x128xf32, #tpu.memory_space<vmem>>, %arg4: memref<1x8x128xf32, #tpu.memory_space<vmem>>) attributes {dimension_semantics = [#tpu.dimension_semantics<parallel>, #tpu.dimension_semantics<arbitrary>], iteration_bounds = array<i64: 1, 1>, scalar_prefetch = 0 : i64, scratch_operands = 0 : i64, tpu.core_type = #tpu.core_type<tc>, window_params = [{transform_indices = @transform_0, window_bounds = array<i64: 30, 8, 128>}, {transform_indices = @transform_1, window_bounds = array<i64: 30, 8, 128>}, {transform_indices = @transform_2, window_bounds = array<i64: 1, 8, 128>}]} {
    %c0_i32 = arith.constant 0 : i32
    %0 = arith.cmpi eq, %arg1, %c0_i32 : i32
    %1 = arith.extui %0 : i1 to i32
    %c0_i32_0 = arith.constant 0 : i32
    %2 = arith.cmpi ne, %1, %c0_i32_0 : i32
    scf.if %2 {
      %cst_218 = arith.constant 0.000000e+00 : f32
      %371 = vector.broadcast %cst_218 : f32 to vector<1x8x128xf32>
      %c0_219 = arith.constant 0 : index
      %c0_220 = arith.constant 0 : index
      %c0_221 = arith.constant 0 : index
      %372 = vector.load %arg4[%c0_219, %c0_220, %c0_221] : memref<1x8x128xf32, #tpu.memory_space<vmem>>, vector<1x8x128xf32>
      tpu.vector_store %arg4[%c0_219, %c0_220, %c0_221], %371 {strides = array<i32>} : memref<1x8x128xf32, #tpu.memory_space<vmem>>, vector<1x8x128xf32>,
    } else {
    }
    %cst = arith.constant 0.000000e+00 : f32
    %3 = vector.broadcast %cst : f32 to vector<8x128xf32>
    %cst_1 = arith.constant 0.000000e+00 : f32
    %4 = vector.broadcast %cst_1 : f32 to vector<8x128xf32>
    %cst_2 = arith.constant 0.000000e+00 : f32
    %5 = vector.broadcast %cst_2 : f32 to vector<8x128xf32>
    %cst_3 = arith.constant 0.000000e+00 : f32
    %6 = vector.broadcast %cst_3 : f32 to vector<8x128xf32>
    %cst_4 = arith.constant 0.000000e+00 : f32
    %7 = vector.broadcast %cst_4 : f32 to vector<8x128xf32>
    %c4 = arith.constant 4 : index
    %c0 = arith.constant 0 : index
    %c0_5 = arith.constant 0 : index
    %8 = vector.load %arg3[%c4, %c0, %c0_5] : memref<30x8x128xf32, #tpu.memory_space<vmem>>, vector<1x8x128xf32>
    %9 = vector.shape_cast %8 : vector<1x8x128xf32> to vector<8x128xf32>
    %cst_6 = arith.constant 0.000000e+00 : f32
    %10 = vector.broadcast %cst_6 : f32 to vector<8x128xf32>
    %11 = arith.cmpf ogt, %9, %10 : vector<8x128xf32>
    %cst_7 = arith.constant 0.000000e+00 : f32
    %12 = vector.broadcast %cst_7 : f32 to vector<8x128xf32>
    %13 = arith.cmpf oeq, %9, %12 : vector<8x128xf32>
    %c0_8 = arith.constant 0 : index
    %c0_9 = arith.constant 0 : index
    %c0_10 = arith.constant 0 : index
    %14 = vector.load %arg2[%c0_8, %c0_9, %c0_10] : memref<30x8x128xf32, #tpu.memory_space<vmem>>, vector<1x8x128xf32>
    %15 = vector.shape_cast %14 : vector<1x8x128xf32> to vector<8x128xf32>
    %c1 = arith.constant 1 : index
    %c0_11 = arith.constant 0 : index
    %c0_12 = arith.constant 0 : index
    %16 = vector.load %arg2[%c1, %c0_11, %c0_12] : memref<30x8x128xf32, #tpu.memory_space<vmem>>, vector<1x8x128xf32>
    %17 = vector.shape_cast %16 : vector<1x8x128xf32> to vector<8x128xf32>
    %c2 = arith.constant 2 : index
    %c0_13 = arith.constant 0 : index
    %c0_14 = arith.constant 0 : index
    %18 = vector.load %arg2[%c2, %c0_13, %c0_14] : memref<30x8x128xf32, #tpu.memory_space<vmem>>, vector<1x8x128xf32>
    %19 = vector.shape_cast %18 : vector<1x8x128xf32> to vector<8x128xf32>
    %c3 = arith.constant 3 : index
    %c0_15 = arith.constant 0 : index
    %c0_16 = arith.constant 0 : index
    %20 = vector.load %arg2[%c3, %c0_15, %c0_16] : memref<30x8x128xf32, #tpu.memory_space<vmem>>, vector<1x8x128xf32>
    %21 = vector.shape_cast %20 : vector<1x8x128xf32> to vector<8x128xf32>
    %c4_17 = arith.constant 4 : index
    %c0_18 = arith.constant 0 : index
    %c0_19 = arith.constant 0 : index
    %22 = vector.load %arg2[%c4_17, %c0_18, %c0_19] : memref<30x8x128xf32, #tpu.memory_space<vmem>>, vector<1x8x128xf32>
    %23 = vector.shape_cast %22 : vector<1x8x128xf32> to vector<8x128xf32>
    %c5 = arith.constant 5 : index
    %c0_20 = arith.constant 0 : index
    %c0_21 = arith.constant 0 : index
    %24 = vector.load %arg2[%c5, %c0_20, %c0_21] : memref<30x8x128xf32, #tpu.memory_space<vmem>>, vector<1x8x128xf32>
    %25 = vector.shape_cast %24 : vector<1x8x128xf32> to vector<8x128xf32>
    %c6 = arith.constant 6 : index
    %c0_22 = arith.constant 0 : index
    %c0_23 = arith.constant 0 : index
    %26 = vector.load %arg2[%c6, %c0_22, %c0_23] : memref<30x8x128xf32, #tpu.memory_space<vmem>>, vector<1x8x128xf32>
    %27 = vector.shape_cast %26 : vector<1x8x128xf32> to vector<8x128xf32>
    %c7 = arith.constant 7 : index
    %c0_24 = arith.constant 0 : index
    %c0_25 = arith.constant 0 : index
    %28 = vector.load %arg2[%c7, %c0_24, %c0_25] : memref<30x8x128xf32, #tpu.memory_space<vmem>>, vector<1x8x128xf32>
    %29 = vector.shape_cast %28 : vector<1x8x128xf32> to vector<8x128xf32>
    %c8 = arith.constant 8 : index
    %c0_26 = arith.constant 0 : index
    %c0_27 = arith.constant 0 : index
    %30 = vector.load %arg2[%c8, %c0_26, %c0_27] : memref<30x8x128xf32, #tpu.memory_space<vmem>>, vector<1x8x128xf32>
    %31 = vector.shape_cast %30 : vector<1x8x128xf32> to vector<8x128xf32>
    %c9 = arith.constant 9 : index
    %c0_28 = arith.constant 0 : index
    %c0_29 = arith.constant 0 : index
    %32 = vector.load %arg2[%c9, %c0_28, %c0_29] : memref<30x8x128xf32, #tpu.memory_space<vmem>>, vector<1x8x128xf32>
    %33 = vector.shape_cast %32 : vector<1x8x128xf32> to vector<8x128xf32>
    %c0_30 = arith.constant 0 : index
    %c0_31 = arith.constant 0 : index
    %c0_32 = arith.constant 0 : index
    %34 = vector.load %arg3[%c0_30, %c0_31, %c0_32] : memref<30x8x128xf32, #tpu.memory_space<vmem>>, vector<1x8x128xf32>
    %35 = vector.shape_cast %34 : vector<1x8x128xf32> to vector<8x128xf32>
    %c1_33 = arith.constant 1 : index
    %c0_34 = arith.constant 0 : index
    %c0_35 = arith.constant 0 : index
    %36 = vector.load %arg3[%c1_33, %c0_34, %c0_35] : memref<30x8x128xf32, #tpu.memory_space<vmem>>, vector<1x8x128xf32>
    %37 = vector.shape_cast %36 : vector<1x8x128xf32> to vector<8x128xf32>
    %c2_36 = arith.constant 2 : index
    %c0_37 = arith.constant 0 : index
    %c0_38 = arith.constant 0 : index
    %38 = vector.load %arg3[%c2_36, %c0_37, %c0_38] : memref<30x8x128xf32, #tpu.memory_space<vmem>>, vector<1x8x128xf32>
    %39 = vector.shape_cast %38 : vector<1x8x128xf32> to vector<8x128xf32>
    %c3_39 = arith.constant 3 : index
    %c0_40 = arith.constant 0 : index
    %c0_41 = arith.constant 0 : index
    %40 = vector.load %arg3[%c3_39, %c0_40, %c0_41] : memref<30x8x128xf32, #tpu.memory_space<vmem>>, vector<1x8x128xf32>
    %41 = vector.shape_cast %40 : vector<1x8x128xf32> to vector<8x128xf32>
    %c5_42 = arith.constant 5 : index
    %c0_43 = arith.constant 0 : index
    %c0_44 = arith.constant 0 : index
    %42 = vector.load %arg3[%c5_42, %c0_43, %c0_44] : memref<30x8x128xf32, #tpu.memory_space<vmem>>, vector<1x8x128xf32>
    %43 = vector.shape_cast %42 : vector<1x8x128xf32> to vector<8x128xf32>
    %c6_45 = arith.constant 6 : index
    %c0_46 = arith.constant 0 : index
    %c0_47 = arith.constant 0 : index
    %44 = vector.load %arg3[%c6_45, %c0_46, %c0_47] : memref<30x8x128xf32, #tpu.memory_space<vmem>>, vector<1x8x128xf32>
    %45 = vector.shape_cast %44 : vector<1x8x128xf32> to vector<8x128xf32>
    %c7_48 = arith.constant 7 : index
    %c0_49 = arith.constant 0 : index
    %c0_50 = arith.constant 0 : index
    %46 = vector.load %arg3[%c7_48, %c0_49, %c0_50] : memref<30x8x128xf32, #tpu.memory_space<vmem>>, vector<1x8x128xf32>
    %47 = vector.shape_cast %46 : vector<1x8x128xf32> to vector<8x128xf32>
    %c8_51 = arith.constant 8 : index
    %c0_52 = arith.constant 0 : index
    %c0_53 = arith.constant 0 : index
    %48 = vector.load %arg3[%c8_51, %c0_52, %c0_53] : memref<30x8x128xf32, #tpu.memory_space<vmem>>, vector<1x8x128xf32>
    %49 = vector.shape_cast %48 : vector<1x8x128xf32> to vector<8x128xf32>
    %c9_54 = arith.constant 9 : index
    %c0_55 = arith.constant 0 : index
    %c0_56 = arith.constant 0 : index
    %50 = vector.load %arg3[%c9_54, %c0_55, %c0_56] : memref<30x8x128xf32, #tpu.memory_space<vmem>>, vector<1x8x128xf32>
    %51 = vector.shape_cast %50 : vector<1x8x128xf32> to vector<8x128xf32>
    %cst_57 = arith.constant 0.142857149 : f32
    %52 = vector.broadcast %cst_57 : f32 to vector<8x128xf32>
    %53 = arith.mulf %35, %52 : vector<8x128xf32>
    %cst_58 = arith.constant 0.142857149 : f32
    %54 = vector.broadcast %cst_58 : f32 to vector<8x128xf32>
    %55 = arith.mulf %37, %54 : vector<8x128xf32>
    %cst_59 = arith.constant 5.000000e-01 : f32
    %56 = vector.broadcast %cst_59 : f32 to vector<8x128xf32>
    %57 = arith.mulf %56, %39 : vector<8x128xf32>
    %58 = arith.subf %53, %57 : vector<8x128xf32>
    %cst_60 = arith.constant 5.000000e-01 : f32
    %59 = vector.broadcast %cst_60 : f32 to vector<8x128xf32>
    %60 = arith.mulf %59, %41 : vector<8x128xf32>
    %61 = arith.subf %55, %60 : vector<8x128xf32>
    %cst_61 = arith.constant 5.000000e-01 : f32
    %62 = vector.broadcast %cst_61 : f32 to vector<8x128xf32>
    %63 = arith.mulf %62, %39 : vector<8x128xf32>
    %64 = arith.addf %53, %63 : vector<8x128xf32>
    %cst_62 = arith.constant 5.000000e-01 : f32
    %65 = vector.broadcast %cst_62 : f32 to vector<8x128xf32>
    %66 = arith.mulf %65, %41 : vector<8x128xf32>
    %67 = arith.addf %55, %66 : vector<8x128xf32>
    %68 = arith.subf %64, %58 : vector<8x128xf32>
    %69 = arith.subf %67, %61 : vector<8x128xf32>
    %70 = arith.mulf %68, %69 : vector<8x128xf32>
    %cst_63 = arith.constant 0.142857149 : f32
    %71 = vector.broadcast %cst_63 : f32 to vector<8x128xf32>
    %72 = arith.mulf %15, %71 : vector<8x128xf32>
    %cst_64 = arith.constant 0.142857149 : f32
    %73 = vector.broadcast %cst_64 : f32 to vector<8x128xf32>
    %74 = arith.mulf %17, %73 : vector<8x128xf32>
    %cst_65 = arith.constant 5.000000e-01 : f32
    %75 = vector.broadcast %cst_65 : f32 to vector<8x128xf32>
    %76 = arith.mulf %75, %19 : vector<8x128xf32>
    %77 = arith.subf %72, %76 : vector<8x128xf32>
    %cst_66 = arith.constant 5.000000e-01 : f32
    %78 = vector.broadcast %cst_66 : f32 to vector<8x128xf32>
    %79 = arith.mulf %78, %21 : vector<8x128xf32>
    %80 = arith.subf %74, %79 : vector<8x128xf32>
    %cst_67 = arith.constant 5.000000e-01 : f32
    %81 = vector.broadcast %cst_67 : f32 to vector<8x128xf32>
    %82 = arith.mulf %81, %19 : vector<8x128xf32>
    %83 = arith.addf %72, %82 : vector<8x128xf32>
    %cst_68 = arith.constant 5.000000e-01 : f32
    %84 = vector.broadcast %cst_68 : f32 to vector<8x128xf32>
    %85 = arith.mulf %84, %21 : vector<8x128xf32>
    %86 = arith.addf %74, %85 : vector<8x128xf32>
    %87 = arith.minimumf %83, %64 : vector<8x128xf32>
    %88 = arith.maximumf %77, %58 : vector<8x128xf32>
    %89 = arith.subf %87, %88 : vector<8x128xf32>
    %cst_69 = arith.constant 0.000000e+00 : f32
    %90 = vector.broadcast %cst_69 : f32 to vector<8x128xf32>
    %91 = arith.maximumf %89, %90 : vector<8x128xf32>
    %92 = arith.minimumf %86, %67 : vector<8x128xf32>
    %93 = arith.maximumf %80, %61 : vector<8x128xf32>
    %94 = arith.subf %92, %93 : vector<8x128xf32>
    %cst_70 = arith.constant 0.000000e+00 : f32
    %95 = vector.broadcast %cst_70 : f32 to vector<8x128xf32>
    %96 = arith.maximumf %94, %95 : vector<8x128xf32>
    %97 = arith.mulf %91, %96 : vector<8x128xf32>
    %98 = arith.subf %83, %77 : vector<8x128xf32>
    %99 = arith.subf %86, %80 : vector<8x128xf32>
    %100 = arith.mulf %98, %99 : vector<8x128xf32>
    %101 = arith.addf %100, %70 : vector<8x128xf32>
    %102 = arith.subf %101, %97 : vector<8x128xf32>
    %103 = tpu.reciprocal %102 {approx = true} : vector<8x128xf32> -> vector<8x128xf32>
    %104 = arith.mulf %102, %103 : vector<8x128xf32>
    %cst_71 = arith.constant 2.000000e+00 : f32
    %105 = vector.broadcast %cst_71 : f32 to vector<8x128xf32>
    %106 = arith.subf %105, %104 : vector<8x128xf32>
    %107 = arith.mulf %103, %106 : vector<8x128xf32>
    %108 = arith.mulf %97, %107 : vector<8x128xf32>
    %cst_72 = arith.constant 0.142857149 : f32
    %109 = vector.broadcast %cst_72 : f32 to vector<8x128xf32>
    %110 = arith.mulf %25, %109 : vector<8x128xf32>
    %cst_73 = arith.constant 0.142857149 : f32
    %111 = vector.broadcast %cst_73 : f32 to vector<8x128xf32>
    %112 = arith.mulf %27, %111 : vector<8x128xf32>
    %cst_74 = arith.constant 5.000000e-01 : f32
    %113 = vector.broadcast %cst_74 : f32 to vector<8x128xf32>
    %114 = arith.mulf %113, %29 : vector<8x128xf32>
    %115 = arith.subf %110, %114 : vector<8x128xf32>
    %cst_75 = arith.constant 5.000000e-01 : f32
    %116 = vector.broadcast %cst_75 : f32 to vector<8x128xf32>
    %117 = arith.mulf %116, %31 : vector<8x128xf32>
    %118 = arith.subf %112, %117 : vector<8x128xf32>
    %cst_76 = arith.constant 5.000000e-01 : f32
    %119 = vector.broadcast %cst_76 : f32 to vector<8x128xf32>
    %120 = arith.mulf %119, %29 : vector<8x128xf32>
    %121 = arith.addf %110, %120 : vector<8x128xf32>
    %cst_77 = arith.constant 5.000000e-01 : f32
    %122 = vector.broadcast %cst_77 : f32 to vector<8x128xf32>
    %123 = arith.mulf %122, %31 : vector<8x128xf32>
    %124 = arith.addf %112, %123 : vector<8x128xf32>
    %125 = arith.minimumf %121, %64 : vector<8x128xf32>
    %126 = arith.maximumf %115, %58 : vector<8x128xf32>
    %127 = arith.subf %125, %126 : vector<8x128xf32>
    %cst_78 = arith.constant 0.000000e+00 : f32
    %128 = vector.broadcast %cst_78 : f32 to vector<8x128xf32>
    %129 = arith.maximumf %127, %128 : vector<8x128xf32>
    %130 = arith.minimumf %124, %67 : vector<8x128xf32>
    %131 = arith.maximumf %118, %61 : vector<8x128xf32>
    %132 = arith.subf %130, %131 : vector<8x128xf32>
    %cst_79 = arith.constant 0.000000e+00 : f32
    %133 = vector.broadcast %cst_79 : f32 to vector<8x128xf32>
    %134 = arith.maximumf %132, %133 : vector<8x128xf32>
    %135 = arith.mulf %129, %134 : vector<8x128xf32>
    %136 = arith.subf %121, %115 : vector<8x128xf32>
    %137 = arith.subf %124, %118 : vector<8x128xf32>
    %138 = arith.mulf %136, %137 : vector<8x128xf32>
    %139 = arith.addf %138, %70 : vector<8x128xf32>
    %140 = arith.subf %139, %135 : vector<8x128xf32>
    %141 = tpu.reciprocal %140 {approx = true} : vector<8x128xf32> -> vector<8x128xf32>
    %142 = arith.mulf %140, %141 : vector<8x128xf32>
    %cst_80 = arith.constant 2.000000e+00 : f32
    %143 = vector.broadcast %cst_80 : f32 to vector<8x128xf32>
    %144 = arith.subf %143, %142 : vector<8x128xf32>
    %145 = arith.mulf %141, %144 : vector<8x128xf32>
    %146 = arith.mulf %135, %145 : vector<8x128xf32>
    %147 = arith.cmpf ogt, %146, %108 : vector<8x128xf32>
    %148 = arith.select %147, %146, %108 : vector<8x128xi1>, vector<8x128xf32>
    %149 = arith.select %147, %25, %15 : vector<8x128xi1>, vector<8x128xf32>
    %150 = arith.select %147, %27, %17 : vector<8x128xi1>, vector<8x128xf32>
    %151 = arith.select %147, %29, %19 : vector<8x128xi1>, vector<8x128xf32>
    %152 = arith.select %147, %31, %21 : vector<8x128xi1>, vector<8x128xf32>
    %153 = arith.select %147, %33, %23 : vector<8x128xi1>, vector<8x128xf32>
    %154 = arith.select %147, %43, %35 : vector<8x128xi1>, vector<8x128xf32>
    %155 = arith.select %147, %45, %37 : vector<8x128xi1>, vector<8x128xf32>
    %156 = arith.select %147, %47, %39 : vector<8x128xi1>, vector<8x128xf32>
    %157 = arith.select %147, %49, %41 : vector<8x128xi1>, vector<8x128xf32>
    %158 = arith.subf %149, %154 : vector<8x128xf32>
    %159 = arith.mulf %158, %158 : vector<8x128xf32>
    %160 = arith.subf %150, %155 : vector<8x128xf32>
    %161 = arith.mulf %160, %160 : vector<8x128xf32>
    %162 = arith.addf %159, %161 : vector<8x128xf32>
    %163 = math.sqrt %151 : vector<8x128xf32>
    %164 = math.sqrt %156 : vector<8x128xf32>
    %165 = arith.subf %163, %164 : vector<8x128xf32>
    %166 = arith.mulf %165, %165 : vector<8x128xf32>
    %167 = math.sqrt %152 : vector<8x128xf32>
    %168 = math.sqrt %157 : vector<8x128xf32>
    %169 = arith.subf %167, %168 : vector<8x128xf32>
    %170 = arith.mulf %169, %169 : vector<8x128xf32>
    %171 = arith.addf %166, %170 : vector<8x128xf32>
    %172 = arith.subf %153, %148 : vector<8x128xf32>
    %173 = arith.mulf %172, %172 : vector<8x128xf32>
    %174 = arith.subf %23, %9 : vector<8x128xf32>
    %175 = arith.mulf %174, %174 : vector<8x128xf32>
    %176 = arith.subf %33, %51 : vector<8x128xf32>
    %177 = arith.mulf %176, %176 : vector<8x128xf32>
    %178 = arith.addf %175, %177 : vector<8x128xf32>
    %cst_81 = arith.constant 0.000000e+00 : f32
    %179 = vector.broadcast %cst_81 : f32 to vector<8x128xf32>
    %c10 = arith.constant 10 : index
    %c0_82 = arith.constant 0 : index
    %c0_83 = arith.constant 0 : index
    %180 = vector.load %arg2[%c10, %c0_82, %c0_83] : memref<30x8x128xf32, #tpu.memory_space<vmem>>, vector<1x8x128xf32>
    %181 = vector.shape_cast %180 : vector<1x8x128xf32> to vector<8x128xf32>
    %c10_84 = arith.constant 10 : index
    %c0_85 = arith.constant 0 : index
    %c0_86 = arith.constant 0 : index
    %182 = vector.load %arg3[%c10_84, %c0_85, %c0_86] : memref<30x8x128xf32, #tpu.memory_space<vmem>>, vector<1x8x128xf32>
    %183 = vector.shape_cast %182 : vector<1x8x128xf32> to vector<8x128xf32>
    %184 = arith.subf %181, %183 : vector<8x128xf32>
    %185 = arith.mulf %184, %184 : vector<8x128xf32>
    %186 = arith.addf %179, %185 : vector<8x128xf32>
    %c11 = arith.constant 11 : index
    %c0_87 = arith.constant 0 : index
    %c0_88 = arith.constant 0 : index
    %187 = vector.load %arg2[%c11, %c0_87, %c0_88] : memref<30x8x128xf32, #tpu.memory_space<vmem>>, vector<1x8x128xf32>
    %188 = vector.shape_cast %187 : vector<1x8x128xf32> to vector<8x128xf32>
    %c11_89 = arith.constant 11 : index
    %c0_90 = arith.constant 0 : index
    %c0_91 = arith.constant 0 : index
    %189 = vector.load %arg3[%c11_89, %c0_90, %c0_91] : memref<30x8x128xf32, #tpu.memory_space<vmem>>, vector<1x8x128xf32>
    %190 = vector.shape_cast %189 : vector<1x8x128xf32> to vector<8x128xf32>
    %191 = arith.subf %188, %190 : vector<8x128xf32>
    %192 = arith.mulf %191, %191 : vector<8x128xf32>
    %193 = arith.addf %186, %192 : vector<8x128xf32>
    %c12 = arith.constant 12 : index
    %c0_92 = arith.constant 0 : index
    %c0_93 = arith.constant 0 : index
    %194 = vector.load %arg2[%c12, %c0_92, %c0_93] : memref<30x8x128xf32, #tpu.memory_space<vmem>>, vector<1x8x128xf32>
    %195 = vector.shape_cast %194 : vector<1x8x128xf32> to vector<8x128xf32>
    %c12_94 = arith.constant 12 : index
    %c0_95 = arith.constant 0 : index
    %c0_96 = arith.constant 0 : index
    %196 = vector.load %arg3[%c12_94, %c0_95, %c0_96] : memref<30x8x128xf32, #tpu.memory_space<vmem>>, vector<1x8x128xf32>
    %197 = vector.shape_cast %196 : vector<1x8x128xf32> to vector<8x128xf32>
    %198 = arith.subf %195, %197 : vector<8x128xf32>
    %199 = arith.mulf %198, %198 : vector<8x128xf32>
    %200 = arith.addf %193, %199 : vector<8x128xf32>
    %c13 = arith.constant 13 : index
    %c0_97 = arith.constant 0 : index
    %c0_98 = arith.constant 0 : index
    %201 = vector.load %arg2[%c13, %c0_97, %c0_98] : memref<30x8x128xf32, #tpu.memory_space<vmem>>, vector<1x8x128xf32>
    %202 = vector.shape_cast %201 : vector<1x8x128xf32> to vector<8x128xf32>
    %c13_99 = arith.constant 13 : index
    %c0_100 = arith.constant 0 : index
    %c0_101 = arith.constant 0 : index
    %203 = vector.load %arg3[%c13_99, %c0_100, %c0_101] : memref<30x8x128xf32, #tpu.memory_space<vmem>>, vector<1x8x128xf32>
    %204 = vector.shape_cast %203 : vector<1x8x128xf32> to vector<8x128xf32>
    %205 = arith.subf %202, %204 : vector<8x128xf32>
    %206 = arith.mulf %205, %205 : vector<8x128xf32>
    %207 = arith.addf %200, %206 : vector<8x128xf32>
    %c14 = arith.constant 14 : index
    %c0_102 = arith.constant 0 : index
    %c0_103 = arith.constant 0 : index
    %208 = vector.load %arg2[%c14, %c0_102, %c0_103] : memref<30x8x128xf32, #tpu.memory_space<vmem>>, vector<1x8x128xf32>
    %209 = vector.shape_cast %208 : vector<1x8x128xf32> to vector<8x128xf32>
    %c14_104 = arith.constant 14 : index
    %c0_105 = arith.constant 0 : index
    %c0_106 = arith.constant 0 : index
    %210 = vector.load %arg3[%c14_104, %c0_105, %c0_106] : memref<30x8x128xf32, #tpu.memory_space<vmem>>, vector<1x8x128xf32>
    %211 = vector.shape_cast %210 : vector<1x8x128xf32> to vector<8x128xf32>
    %212 = arith.subf %209, %211 : vector<8x128xf32>
    %213 = arith.mulf %212, %212 : vector<8x128xf32>
    %214 = arith.addf %207, %213 : vector<8x128xf32>
    %c15 = arith.constant 15 : index
    %c0_107 = arith.constant 0 : index
    %c0_108 = arith.constant 0 : index
    %215 = vector.load %arg2[%c15, %c0_107, %c0_108] : memref<30x8x128xf32, #tpu.memory_space<vmem>>, vector<1x8x128xf32>
    %216 = vector.shape_cast %215 : vector<1x8x128xf32> to vector<8x128xf32>
    %c15_109 = arith.constant 15 : index
    %c0_110 = arith.constant 0 : index
    %c0_111 = arith.constant 0 : index
    %217 = vector.load %arg3[%c15_109, %c0_110, %c0_111] : memref<30x8x128xf32, #tpu.memory_space<vmem>>, vector<1x8x128xf32>
    %218 = vector.shape_cast %217 : vector<1x8x128xf32> to vector<8x128xf32>
    %219 = arith.subf %216, %218 : vector<8x128xf32>
    %220 = arith.mulf %219, %219 : vector<8x128xf32>
    %221 = arith.addf %214, %220 : vector<8x128xf32>
    %c16 = arith.constant 16 : index
    %c0_112 = arith.constant 0 : index
    %c0_113 = arith.constant 0 : index
    %222 = vector.load %arg2[%c16, %c0_112, %c0_113] : memref<30x8x128xf32, #tpu.memory_space<vmem>>, vector<1x8x128xf32>
    %223 = vector.shape_cast %222 : vector<1x8x128xf32> to vector<8x128xf32>
    %c16_114 = arith.constant 16 : index
    %c0_115 = arith.constant 0 : index
    %c0_116 = arith.constant 0 : index
    %224 = vector.load %arg3[%c16_114, %c0_115, %c0_116] : memref<30x8x128xf32, #tpu.memory_space<vmem>>, vector<1x8x128xf32>
    %225 = vector.shape_cast %224 : vector<1x8x128xf32> to vector<8x128xf32>
    %226 = arith.subf %223, %225 : vector<8x128xf32>
    %227 = arith.mulf %226, %226 : vector<8x128xf32>
    %228 = arith.addf %221, %227 : vector<8x128xf32>
    %c17 = arith.constant 17 : index
    %c0_117 = arith.constant 0 : index
    %c0_118 = arith.constant 0 : index
    %229 = vector.load %arg2[%c17, %c0_117, %c0_118] : memref<30x8x128xf32, #tpu.memory_space<vmem>>, vector<1x8x128xf32>
    %230 = vector.shape_cast %229 : vector<1x8x128xf32> to vector<8x128xf32>
    %c17_119 = arith.constant 17 : index
    %c0_120 = arith.constant 0 : index
    %c0_121 = arith.constant 0 : index
    %231 = vector.load %arg3[%c17_119, %c0_120, %c0_121] : memref<30x8x128xf32, #tpu.memory_space<vmem>>, vector<1x8x128xf32>
    %232 = vector.shape_cast %231 : vector<1x8x128xf32> to vector<8x128xf32>
    %233 = arith.subf %230, %232 : vector<8x128xf32>
    %234 = arith.mulf %233, %233 : vector<8x128xf32>
    %235 = arith.addf %228, %234 : vector<8x128xf32>
    %c18 = arith.constant 18 : index
    %c0_122 = arith.constant 0 : index
    %c0_123 = arith.constant 0 : index
    %236 = vector.load %arg2[%c18, %c0_122, %c0_123] : memref<30x8x128xf32, #tpu.memory_space<vmem>>, vector<1x8x128xf32>
    %237 = vector.shape_cast %236 : vector<1x8x128xf32> to vector<8x128xf32>
    %c18_124 = arith.constant 18 : index
    %c0_125 = arith.constant 0 : index
    %c0_126 = arith.constant 0 : index
    %238 = vector.load %arg3[%c18_124, %c0_125, %c0_126] : memref<30x8x128xf32, #tpu.memory_space<vmem>>, vector<1x8x128xf32>
    %239 = vector.shape_cast %238 : vector<1x8x128xf32> to vector<8x128xf32>
    %240 = arith.subf %237, %239 : vector<8x128xf32>
    %241 = arith.mulf %240, %240 : vector<8x128xf32>
    %242 = arith.addf %235, %241 : vector<8x128xf32>
    %c19 = arith.constant 19 : index
    %c0_127 = arith.constant 0 : index
    %c0_128 = arith.constant 0 : index
    %243 = vector.load %arg2[%c19, %c0_127, %c0_128] : memref<30x8x128xf32, #tpu.memory_space<vmem>>, vector<1x8x128xf32>
    %244 = vector.shape_cast %243 : vector<1x8x128xf32> to vector<8x128xf32>
    %c19_129 = arith.constant 19 : index
    %c0_130 = arith.constant 0 : index
    %c0_131 = arith.constant 0 : index
    %245 = vector.load %arg3[%c19_129, %c0_130, %c0_131] : memref<30x8x128xf32, #tpu.memory_space<vmem>>, vector<1x8x128xf32>
    %246 = vector.shape_cast %245 : vector<1x8x128xf32> to vector<8x128xf32>
    %247 = arith.subf %244, %246 : vector<8x128xf32>
    %248 = arith.mulf %247, %247 : vector<8x128xf32>
    %249 = arith.addf %242, %248 : vector<8x128xf32>
    %c20 = arith.constant 20 : index
    %c0_132 = arith.constant 0 : index
    %c0_133 = arith.constant 0 : index
    %250 = vector.load %arg2[%c20, %c0_132, %c0_133] : memref<30x8x128xf32, #tpu.memory_space<vmem>>, vector<1x8x128xf32>
    %251 = vector.shape_cast %250 : vector<1x8x128xf32> to vector<8x128xf32>
    %c20_134 = arith.constant 20 : index
    %c0_135 = arith.constant 0 : index
    %c0_136 = arith.constant 0 : index
    %252 = vector.load %arg3[%c20_134, %c0_135, %c0_136] : memref<30x8x128xf32, #tpu.memory_space<vmem>>, vector<1x8x128xf32>
    %253 = vector.shape_cast %252 : vector<1x8x128xf32> to vector<8x128xf32>
    %254 = arith.subf %251, %253 : vector<8x128xf32>
    %255 = arith.mulf %254, %254 : vector<8x128xf32>
    %256 = arith.addf %249, %255 : vector<8x128xf32>
    %c21 = arith.constant 21 : index
    %c0_137 = arith.constant 0 : index
    %c0_138 = arith.constant 0 : index
    %257 = vector.load %arg2[%c21, %c0_137, %c0_138] : memref<30x8x128xf32, #tpu.memory_space<vmem>>, vector<1x8x128xf32>
    %258 = vector.shape_cast %257 : vector<1x8x128xf32> to vector<8x128xf32>
    %c21_139 = arith.constant 21 : index
    %c0_140 = arith.constant 0 : index
    %c0_141 = arith.constant 0 : index
    %259 = vector.load %arg3[%c21_139, %c0_140, %c0_141] : memref<30x8x128xf32, #tpu.memory_space<vmem>>, vector<1x8x128xf32>
    %260 = vector.shape_cast %259 : vector<1x8x128xf32> to vector<8x128xf32>
    %261 = arith.subf %258, %260 : vector<8x128xf32>
    %262 = arith.mulf %261, %261 : vector<8x128xf32>
    %263 = arith.addf %256, %262 : vector<8x128xf32>
    %c22 = arith.constant 22 : index
    %c0_142 = arith.constant 0 : index
    %c0_143 = arith.constant 0 : index
    %264 = vector.load %arg2[%c22, %c0_142, %c0_143] : memref<30x8x128xf32, #tpu.memory_space<vmem>>, vector<1x8x128xf32>
    %265 = vector.shape_cast %264 : vector<1x8x128xf32> to vector<8x128xf32>
    %c22_144 = arith.constant 22 : index
    %c0_145 = arith.constant 0 : index
    %c0_146 = arith.constant 0 : index
    %266 = vector.load %arg3[%c22_144, %c0_145, %c0_146] : memref<30x8x128xf32, #tpu.memory_space<vmem>>, vector<1x8x128xf32>
    %267 = vector.shape_cast %266 : vector<1x8x128xf32> to vector<8x128xf32>
    %268 = arith.subf %265, %267 : vector<8x128xf32>
    %269 = arith.mulf %268, %268 : vector<8x128xf32>
    %270 = arith.addf %263, %269 : vector<8x128xf32>
    %c23 = arith.constant 23 : index
    %c0_147 = arith.constant 0 : index
    %c0_148 = arith.constant 0 : index
    %271 = vector.load %arg2[%c23, %c0_147, %c0_148] : memref<30x8x128xf32, #tpu.memory_space<vmem>>, vector<1x8x128xf32>
    %272 = vector.shape_cast %271 : vector<1x8x128xf32> to vector<8x128xf32>
    %c23_149 = arith.constant 23 : index
    %c0_150 = arith.constant 0 : index
    %c0_151 = arith.constant 0 : index
    %273 = vector.load %arg3[%c23_149, %c0_150, %c0_151] : memref<30x8x128xf32, #tpu.memory_space<vmem>>, vector<1x8x128xf32>
    %274 = vector.shape_cast %273 : vector<1x8x128xf32> to vector<8x128xf32>
    %275 = arith.subf %272, %274 : vector<8x128xf32>
    %276 = arith.mulf %275, %275 : vector<8x128xf32>
    %277 = arith.addf %270, %276 : vector<8x128xf32>
    %c24 = arith.constant 24 : index
    %c0_152 = arith.constant 0 : index
    %c0_153 = arith.constant 0 : index
    %278 = vector.load %arg2[%c24, %c0_152, %c0_153] : memref<30x8x128xf32, #tpu.memory_space<vmem>>, vector<1x8x128xf32>
    %279 = vector.shape_cast %278 : vector<1x8x128xf32> to vector<8x128xf32>
    %c24_154 = arith.constant 24 : index
    %c0_155 = arith.constant 0 : index
    %c0_156 = arith.constant 0 : index
    %280 = vector.load %arg3[%c24_154, %c0_155, %c0_156] : memref<30x8x128xf32, #tpu.memory_space<vmem>>, vector<1x8x128xf32>
    %281 = vector.shape_cast %280 : vector<1x8x128xf32> to vector<8x128xf32>
    %282 = arith.subf %279, %281 : vector<8x128xf32>
    %283 = arith.mulf %282, %282 : vector<8x128xf32>
    %284 = arith.addf %277, %283 : vector<8x128xf32>
    %c25 = arith.constant 25 : index
    %c0_157 = arith.constant 0 : index
    %c0_158 = arith.constant 0 : index
    %285 = vector.load %arg2[%c25, %c0_157, %c0_158] : memref<30x8x128xf32, #tpu.memory_space<vmem>>, vector<1x8x128xf32>
    %286 = vector.shape_cast %285 : vector<1x8x128xf32> to vector<8x128xf32>
    %c25_159 = arith.constant 25 : index
    %c0_160 = arith.constant 0 : index
    %c0_161 = arith.constant 0 : index
    %287 = vector.load %arg3[%c25_159, %c0_160, %c0_161] : memref<30x8x128xf32, #tpu.memory_space<vmem>>, vector<1x8x128xf32>
    %288 = vector.shape_cast %287 : vector<1x8x128xf32> to vector<8x128xf32>
    %289 = arith.subf %286, %288 : vector<8x128xf32>
    %290 = arith.mulf %289, %289 : vector<8x128xf32>
    %291 = arith.addf %284, %290 : vector<8x128xf32>
    %c26 = arith.constant 26 : index
    %c0_162 = arith.constant 0 : index
    %c0_163 = arith.constant 0 : index
    %292 = vector.load %arg2[%c26, %c0_162, %c0_163] : memref<30x8x128xf32, #tpu.memory_space<vmem>>, vector<1x8x128xf32>
    %293 = vector.shape_cast %292 : vector<1x8x128xf32> to vector<8x128xf32>
    %c26_164 = arith.constant 26 : index
    %c0_165 = arith.constant 0 : index
    %c0_166 = arith.constant 0 : index
    %294 = vector.load %arg3[%c26_164, %c0_165, %c0_166] : memref<30x8x128xf32, #tpu.memory_space<vmem>>, vector<1x8x128xf32>
    %295 = vector.shape_cast %294 : vector<1x8x128xf32> to vector<8x128xf32>
    %296 = arith.subf %293, %295 : vector<8x128xf32>
    %297 = arith.mulf %296, %296 : vector<8x128xf32>
    %298 = arith.addf %291, %297 : vector<8x128xf32>
    %c27 = arith.constant 27 : index
    %c0_167 = arith.constant 0 : index
    %c0_168 = arith.constant 0 : index
    %299 = vector.load %arg2[%c27, %c0_167, %c0_168] : memref<30x8x128xf32, #tpu.memory_space<vmem>>, vector<1x8x128xf32>
    %300 = vector.shape_cast %299 : vector<1x8x128xf32> to vector<8x128xf32>
    %c27_169 = arith.constant 27 : index
    %c0_170 = arith.constant 0 : index
    %c0_171 = arith.constant 0 : index
    %301 = vector.load %arg3[%c27_169, %c0_170, %c0_171] : memref<30x8x128xf32, #tpu.memory_space<vmem>>, vector<1x8x128xf32>
    %302 = vector.shape_cast %301 : vector<1x8x128xf32> to vector<8x128xf32>
    %303 = arith.subf %300, %302 : vector<8x128xf32>
    %304 = arith.mulf %303, %303 : vector<8x128xf32>
    %305 = arith.addf %298, %304 : vector<8x128xf32>
    %c28 = arith.constant 28 : index
    %c0_172 = arith.constant 0 : index
    %c0_173 = arith.constant 0 : index
    %306 = vector.load %arg2[%c28, %c0_172, %c0_173] : memref<30x8x128xf32, #tpu.memory_space<vmem>>, vector<1x8x128xf32>
    %307 = vector.shape_cast %306 : vector<1x8x128xf32> to vector<8x128xf32>
    %c28_174 = arith.constant 28 : index
    %c0_175 = arith.constant 0 : index
    %c0_176 = arith.constant 0 : index
    %308 = vector.load %arg3[%c28_174, %c0_175, %c0_176] : memref<30x8x128xf32, #tpu.memory_space<vmem>>, vector<1x8x128xf32>
    %309 = vector.shape_cast %308 : vector<1x8x128xf32> to vector<8x128xf32>
    %310 = arith.subf %307, %309 : vector<8x128xf32>
    %311 = arith.mulf %310, %310 : vector<8x128xf32>
    %312 = arith.addf %305, %311 : vector<8x128xf32>
    %c29 = arith.constant 29 : index
    %c0_177 = arith.constant 0 : index
    %c0_178 = arith.constant 0 : index
    %313 = vector.load %arg2[%c29, %c0_177, %c0_178] : memref<30x8x128xf32, #tpu.memory_space<vmem>>, vector<1x8x128xf32>
    %314 = vector.shape_cast %313 : vector<1x8x128xf32> to vector<8x128xf32>
    %c29_179 = arith.constant 29 : index
    %c0_180 = arith.constant 0 : index
    %c0_181 = arith.constant 0 : index
    %315 = vector.load %arg3[%c29_179, %c0_180, %c0_181] : memref<30x8x128xf32, #tpu.memory_space<vmem>>, vector<1x8x128xf32>
    %316 = vector.shape_cast %315 : vector<1x8x128xf32> to vector<8x128xf32>
    %317 = arith.subf %314, %316 : vector<8x128xf32>
    %318 = arith.mulf %317, %317 : vector<8x128xf32>
    %319 = arith.addf %312, %318 : vector<8x128xf32>
    %cst_182 = arith.constant 0.000000e+00 : f32
    %320 = vector.broadcast %cst_182 : f32 to vector<8x128xf32>
    %321 = arith.select %11, %162, %320 : vector<8x128xi1>, vector<8x128xf32>
    %322 = arith.addf %3, %321 : vector<8x128xf32>
    %323 = arith.select %11, %171, %320 : vector<8x128xi1>, vector<8x128xf32>
    %324 = arith.addf %4, %323 : vector<8x128xf32>
    %325 = arith.select %11, %173, %320 : vector<8x128xi1>, vector<8x128xf32>
    %326 = arith.addf %5, %325 : vector<8x128xf32>
    %327 = arith.select %13, %178, %320 : vector<8x128xi1>, vector<8x128xf32>
    %328 = arith.addf %6, %327 : vector<8x128xf32>
    %329 = arith.select %11, %319, %320 : vector<8x128xi1>, vector<8x128xf32>
    %330 = arith.addf %7, %329 : vector<8x128xf32>
    %c0_183 = arith.constant 0 : index
    %c0_184 = arith.constant 0 : index
    %c0_185 = arith.constant 0 : index
    %331 = vector.load %arg4[%c0_183, %c0_184, %c0_185] : memref<1x8x128xf32, #tpu.memory_space<vmem>>, vector<1x1x128xf32>
    %332 = vector.shape_cast %331 : vector<1x1x128xf32> to vector<1x128xf32>
    %cst_186 = arith.constant dense<0.000000e+00> : vector<128xf32>
    %333 = vector.multi_reduction <add>, %322, %cst_186 [0] : vector<8x128xf32> to vector<128xf32>
    %334 = vector.shape_cast %333 : vector<128xf32> to vector<1x128xf32>
    %335 = arith.addf %332, %334 : vector<1x128xf32>
    %c0_187 = arith.constant 0 : index
    %c0_188 = arith.constant 0 : index
    %c0_189 = arith.constant 0 : index
    %336 = vector.load %arg4[%c0_187, %c0_188, %c0_189] : memref<1x8x128xf32, #tpu.memory_space<vmem>>, vector<1x1x128xf32>
    %337 = vector.shape_cast %336 : vector<1x1x128xf32> to vector<1x128xf32>
    %338 = vector.shape_cast %335 : vector<1x128xf32> to vector<1x1x128xf32>
    tpu.vector_store %arg4[%c0_187, %c0_188, %c0_189], %338 {strides = array<i32>} : memref<1x8x128xf32, #tpu.memory_space<vmem>>, vector<1x1x128xf32>,
    %c0_190 = arith.constant 0 : index
    %c1_191 = arith.constant 1 : index
    %c0_192 = arith.constant 0 : index
    %339 = vector.load %arg4[%c0_190, %c1_191, %c0_192] : memref<1x8x128xf32, #tpu.memory_space<vmem>>, vector<1x1x128xf32>
    %340 = vector.shape_cast %339 : vector<1x1x128xf32> to vector<1x128xf32>
    %cst_193 = arith.constant dense<0.000000e+00> : vector<128xf32>
    %341 = vector.multi_reduction <add>, %324, %cst_193 [0] : vector<8x128xf32> to vector<128xf32>
    %342 = vector.shape_cast %341 : vector<128xf32> to vector<1x128xf32>
    %343 = arith.addf %340, %342 : vector<1x128xf32>
    %c0_194 = arith.constant 0 : index
    %c1_195 = arith.constant 1 : index
    %c0_196 = arith.constant 0 : index
    %344 = vector.load %arg4[%c0_194, %c1_195, %c0_196] : memref<1x8x128xf32, #tpu.memory_space<vmem>>, vector<1x1x128xf32>
    %345 = vector.shape_cast %344 : vector<1x1x128xf32> to vector<1x128xf32>
    %346 = vector.shape_cast %343 : vector<1x128xf32> to vector<1x1x128xf32>
    tpu.vector_store %arg4[%c0_194, %c1_195, %c0_196], %346 {strides = array<i32>} : memref<1x8x128xf32, #tpu.memory_space<vmem>>, vector<1x1x128xf32>,
    %c0_197 = arith.constant 0 : index
    %c2_198 = arith.constant 2 : index
    %c0_199 = arith.constant 0 : index
    %347 = vector.load %arg4[%c0_197, %c2_198, %c0_199] : memref<1x8x128xf32, #tpu.memory_space<vmem>>, vector<1x1x128xf32>
    %348 = vector.shape_cast %347 : vector<1x1x128xf32> to vector<1x128xf32>
    %cst_200 = arith.constant dense<0.000000e+00> : vector<128xf32>
    %349 = vector.multi_reduction <add>, %326, %cst_200 [0] : vector<8x128xf32> to vector<128xf32>
    %350 = vector.shape_cast %349 : vector<128xf32> to vector<1x128xf32>
    %351 = arith.addf %348, %350 : vector<1x128xf32>
    %c0_201 = arith.constant 0 : index
    %c2_202 = arith.constant 2 : index
    %c0_203 = arith.constant 0 : index
    %352 = vector.load %arg4[%c0_201, %c2_202, %c0_203] : memref<1x8x128xf32, #tpu.memory_space<vmem>>, vector<1x1x128xf32>
    %353 = vector.shape_cast %352 : vector<1x1x128xf32> to vector<1x128xf32>
    %354 = vector.shape_cast %351 : vector<1x128xf32> to vector<1x1x128xf32>
    tpu.vector_store %arg4[%c0_201, %c2_202, %c0_203], %354 {strides = array<i32>} : memref<1x8x128xf32, #tpu.memory_space<vmem>>, vector<1x1x128xf32>,
    %c0_204 = arith.constant 0 : index
    %c3_205 = arith.constant 3 : index
    %c0_206 = arith.constant 0 : index
    %355 = vector.load %arg4[%c0_204, %c3_205, %c0_206] : memref<1x8x128xf32, #tpu.memory_space<vmem>>, vector<1x1x128xf32>
    %356 = vector.shape_cast %355 : vector<1x1x128xf32> to vector<1x128xf32>
    %cst_207 = arith.constant dense<0.000000e+00> : vector<128xf32>
    %357 = vector.multi_reduction <add>, %328, %cst_207 [0] : vector<8x128xf32> to vector<128xf32>
    %358 = vector.shape_cast %357 : vector<128xf32> to vector<1x128xf32>
    %359 = arith.addf %356, %358 : vector<1x128xf32>
    %c0_208 = arith.constant 0 : index
    %c3_209 = arith.constant 3 : index
    %c0_210 = arith.constant 0 : index
    %360 = vector.load %arg4[%c0_208, %c3_209, %c0_210] : memref<1x8x128xf32, #tpu.memory_space<vmem>>, vector<1x1x128xf32>
    %361 = vector.shape_cast %360 : vector<1x1x128xf32> to vector<1x128xf32>
    %362 = vector.shape_cast %359 : vector<1x128xf32> to vector<1x1x128xf32>
    tpu.vector_store %arg4[%c0_208, %c3_209, %c0_210], %362 {strides = array<i32>} : memref<1x8x128xf32, #tpu.memory_space<vmem>>, vector<1x1x128xf32>,
    %c0_211 = arith.constant 0 : index
    %c4_212 = arith.constant 4 : index
    %c0_213 = arith.constant 0 : index
    %363 = vector.load %arg4[%c0_211, %c4_212, %c0_213] : memref<1x8x128xf32, #tpu.memory_space<vmem>>, vector<1x1x128xf32>
    %364 = vector.shape_cast %363 : vector<1x1x128xf32> to vector<1x128xf32>
    %cst_214 = arith.constant dense<0.000000e+00> : vector<128xf32>
    %365 = vector.multi_reduction <add>, %330, %cst_214 [0] : vector<8x128xf32> to vector<128xf32>
    %366 = vector.shape_cast %365 : vector<128xf32> to vector<1x128xf32>
    %367 = arith.addf %364, %366 : vector<1x128xf32>
    %c0_215 = arith.constant 0 : index
    %c4_216 = arith.constant 4 : index
    %c0_217 = arith.constant 0 : index
    %368 = vector.load %arg4[%c0_215, %c4_216, %c0_217] : memref<1x8x128xf32, #tpu.memory_space<vmem>>, vector<1x1x128xf32>
    %369 = vector.shape_cast %368 : vector<1x1x128xf32> to vector<1x128xf32>
    %370 = vector.shape_cast %367 : vector<1x128xf32> to vector<1x1x128xf32>
    tpu.vector_store %arg4[%c0_215, %c4_216, %c0_217], %370 {strides = array<i32>} : memref<1x8x128xf32, #tpu.memory_space<vmem>>, vector<1x1x128xf32>,
    return
  }
  func.func @transform_0(%arg0: i32, %arg1: i32) -> (i32, i32, i32) {
    %c1_i32 = arith.constant 1 : i32
    %0 = arith.muli %arg0, %c1_i32 : i32
    %1 = arith.addi %0, %arg1 : i32
    %c0_i32 = arith.constant 0 : i32
    %c0_i32_0 = arith.constant 0 : i32
    %c0_i32_1 = arith.constant 0 : i32
    return %c0_i32, %1, %c0_i32_0 : i32, i32, i32
  }
  func.func @transform_1(%arg0: i32, %arg1: i32) -> (i32, i32, i32) {
    %c1_i32 = arith.constant 1 : i32
    %0 = arith.muli %arg0, %c1_i32 : i32
    %1 = arith.addi %0, %arg1 : i32
    %c0_i32 = arith.constant 0 : i32
    %c0_i32_0 = arith.constant 0 : i32
    %c0_i32_1 = arith.constant 0 : i32
    return %c0_i32, %1, %c0_i32_0 : i32, i32, i32
  }
  func.func @transform_2(%arg0: i32, %arg1: i32) -> (i32, i32, i32) {
    %c0_i32 = arith.constant 0 : i32
    %c0_i32_0 = arith.constant 0 : i32
    %c0_i32_1 = arith.constant 0 : i32
    return %arg0, %c0_i32, %c0_i32_0 : i32, i32, i32
  }
}

</mosaic_0001>

<bundles_post_ra>
// kernel: yolo_v1_loss.1
= control target key start
LH: loop header
LB: loop body
LE: loop exit
PB: predicated region body
PF: predicated region fallthrough
CT: control target
= control target key end

     0   :  { %v493_v0 = vmov 0.0   ;;  %s871_s2 = inlined_call_operand.vmem [shape: f32[1,8,128], index: 2, kind: output, shape index: {}]   ;;  %s872_s0 = inlined_call_operand.vmem [shape: f32[30,8,128], index: 0, kind: input, shape index: {}]   ;;  %s873_s1 = inlined_call_operand.vmem [shape: f32[30,8,128], index: 1, kind: input, shape index: {}]  }
   0x1   :  { %49 = vst [vmem:[%s871_s2] sm:$0xff] %v493_v0  ;;  %v515_v1 = vld [vmem:[%s872_s0] sm:$0xff]  ;;  %v520_v2 = vld [vmem:[%s872_s0 + $0x8] sm:$0xff]  ;;  %v525_v3 = vld [vmem:[%s872_s0 + $0x10] sm:$0xff] }
   0x2   :  { %v530_v4 = vld [vmem:[%s872_s0 + $0x18] sm:$0xff]  ;;  %v535_v5 = vld [vmem:[%s872_s0 + $0x28] sm:$0xff]  ;;  %v101_v6 = vmul.f32 0.14285715, %v515_v1  ;;  %v541_v7 = vld [vmem:[%s872_s0 + $0x30] sm:$0xff]  ;;  %v103_v9 = vmul.f32 0.5, %v525_v3 }
   0x3   :  { %v102_v8 = vmul.f32 0.14285715, %v520_v2  ;;  %v548_v10 = vld [vmem:[%s873_s1] sm:$0xff]  ;;  %v553_v11 = vld [vmem:[%s873_s1 + $0x8] sm:$0xff]  ;;  %v558_v12 = vld [vmem:[%s873_s1 + $0x10] sm:$0xff]  ;;  %v105_v13 = vmul.f32 0.5, %v530_v4 }
   0x4   :  { %v128_v14 = vmul.f32 0.14285715, %v535_v5  ;;  %v565_v15 = vld [vmem:[%s872_s0 + $0x38] sm:$0xff]  ;;  %v90_v17 = vmul.f32 0.14285715, %v548_v10  ;;  %v92_v18 = vmul.f32 0.5, %v558_v12  ;;  %v104_v19 = vsub.f32 %v101_v6, %v103_v9 }
   0x5   :  { %v570_v16 = vld [vmem:[%s873_s1 + $0x18] sm:$0xff]  ;;  %v107_v20 = vadd.f32 %v103_v9, %v101_v6  ;;  %v577_v21 = vld [vmem:[%s872_s0 + $0x40] sm:$0xff]  ;;  %v91_v22 = vmul.f32 0.14285715, %v553_v11  ;;  %v106_v24 = vsub.f32 %v102_v8, %v105_v13  ;;  %v108_v25 = vadd.f32 %v105_v13, %v102_v8  ;;  %v597_v51 = vld [vmem:[%s872_s0 + $0x48] sm:$0xff] }
   0x6   :  { %v94_v23 = vmul.f32 0.5, %v570_v16  ;;  %v93_v26 = vsub.f32 %v90_v17, %v92_v18  ;;  %v96_v27 = vadd.f32 %v92_v18, %v90_v17  ;;  %v129_v29 = vmul.f32 0.14285715, %v541_v7  ;;  %v587_v42 = vld [vmem:[%s873_s1 + $0x20] sm:$0xff]  ;;  %v439_v52 = vld [vmem:[%s873_s1 + $0x48] sm:$0xff]  ;;  %v440_v53 = vld [vmem:[%s872_s0 + $0x50] sm:$0xff] }
   0x7   :  { %v118_v28 = vsub.f32 %v107_v20, %v104_v19  ;;  %v119_v32 = vsub.f32 %v108_v25, %v106_v24  ;;  %v130_v33 = vmul.f32 0.5, %v565_v15  ;;  %v132_v37 = vmul.f32 0.5, %v577_v21  ;;  %v592_v47 = vld [vmem:[%s872_s0 + $0x20] sm:$0xff]  ;;  %v441_v58 = vld [vmem:[%s873_s1 + $0x50] sm:$0xff]  ;;  %v442_v59 = vld [vmem:[%s872_s0 + $0x58] sm:$0xff] }
   0x8   :  { %v95_v30 = vsub.f32 %v91_v22, %v94_v23  ;;  %v97_v31 = vadd.f32 %v94_v23, %v91_v22  ;;  %v98_v34 = vsub.f32 %v96_v27, %v93_v26  ;;  %v109_v35 = vmin.f32 %v107_v20, %v96_v27  ;;  %v443_v60 = vld [vmem:[%s873_s1 + $0x58] sm:$0xff]  ;;  %v445_v22 = vld [vmem:[%s873_s1 + $0x60] sm:$0xff]  ;;  %v446_v23 = vld [vmem:[%s872_s0 + $0x68] sm:$0xff] }
   0x9   :  { %v110_v36 = vmax.f32 %v104_v19, %v93_v26  ;;  %v120_v41 = vmul.f32 %v119_v32, %v118_v28  ;;  %v131_v44 = vsub.f32 %v128_v14, %v130_v33  ;;  %v133_v45 = vsub.f32 %v129_v29, %v132_v37 }
   0xa   :  { %v99_v38 = vsub.f32 %v97_v31, %v95_v30  ;;  %v113_v39 = vmin.f32 %v108_v25, %v97_v31  ;;  %v114_v40 = vmax.f32 %v106_v24, %v95_v30  ;;  %v134_v46 = vadd.f32 %v130_v33, %v128_v14  ;;  %v444_v14 = vld [vmem:[%s872_s0 + $0x60] sm:$0xff]  ;;  %v447_v24 = vld [vmem:[%s873_s1 + $0x68] sm:$0xff] }
   0xb   :  { %v111_v43 = vsub.f32 %v109_v35, %v110_v36  ;;  %v135_v50 = vadd.f32 %v132_v37, %v129_v29  ;;  %vm53_vm0 = vcmp.eq.f32.partialorder %v587_v42, 0.0  ;;  %v137_v56 = vmax.f32 %v131_v44, %v93_v26  ;;  %v448_v29 = vld [vmem:[%s872_s0 + $0x70] sm:$0xff]  ;;  %v450_v35 = vld [vmem:[%s872_s0 + $0x78] sm:$0xff] }
   0xc   :  { %v100_v48 = vmul.f32 %v99_v38, %v98_v34  ;;  %v115_v49 = vsub.f32 %v113_v39, %v114_v40  ;;  %v136_v55 = vmin.f32 %v134_v46, %v96_v27  ;;  %v141_v57 = vmax.f32 %v133_v45, %v95_v30  ;;  %v449_v30 = vld [vmem:[%s873_s1 + $0x70] sm:$0xff]  ;;  %v451_v36 = vld [vmem:[%s873_s1 + $0x78] sm:$0xff] }
   0xd   :  { %v112_v54 = vmax.f32 %v111_v43, 0.0  ;;  %v140_v63 = vmin.f32 %v135_v50, %v97_v31  ;;  %v145_v0 = vsub.f32 %v134_v46, %v131_v44  ;;  %v146_v8 = vsub.f32 %v135_v50, %v133_v45  ;;  %v452_v45 = vld [vmem:[%s872_s0 + $0x80] sm:$0xff] }
   0xe   :  { %v116_v61 = vmax.f32 %v115_v49, 0.0  ;;  %v121_v62 = vadd.f32 %v120_v41, %v100_v48  ;;  %v138_v6 = vsub.f32 %v136_v55, %v137_v56  ;;  %v206_v9 = vsub.f32 %v592_v47, %v587_v42  ;;  %v453_v46 = vld [vmem:[%s873_s1 + $0x80] sm:$0xff]  ;;  %v454_v55 = vld [vmem:[%s872_s0 + $0x88] sm:$0xff] }
   0xf   :  { %v208_v13 = vsub.f32 %v597_v51, %v439_v52  ;;  %v142_v18 = vsub.f32 %v140_v63, %v141_v57  ;;  %v215_v19 = vsub.f32 %v440_v53, %v441_v58  ;;  %v222_v20 = vsub.f32 %v442_v59, %v443_v60  ;;  %v455_v56 = vld [vmem:[%s873_s1 + $0x88] sm:$0xff] }
  0x10   :  { %v621_v17 = vmul.f32 %v116_v61, %v112_v54  ;;  %v139_v25 = vmax.f32 %v138_v6, 0.0  ;;  %v147_v26 = vmul.f32 %v146_v8, %v145_v0  ;;  %v207_v27 = vmul.f32 %v206_v9, %v206_v9  ;;  %v456_v61 = vld [vmem:[%s872_s0 + $0x90] sm:$0xff]  ;;  %v458_v9 = vld [vmem:[%s872_s0 + $0x98] sm:$0xff] }
  0x11   :  { %v209_v28 = vmul.f32 %v208_v13, %v208_v13  ;;  %v143_v32 = vmax.f32 %v142_v18, 0.0  ;;  %v216_v33 = vmul.f32 %v215_v19, %v215_v19  ;;  %v223_v34 = vmul.f32 %v222_v20, %v222_v20  ;;  %v459_v13 = vld [vmem:[%s873_s1 + $0x98] sm:$0xff] }
  0x12   :  { %v122_v31 = vsub.f32 %v121_v62, %v621_v17  ;;  %v148_v37 = vadd.f32 %v147_v26, %v100_v48  ;;  %v229_v39 = vsub.f32 %v444_v14, %v445_v22  ;;  %v236_v40 = vsub.f32 %v446_v23, %v447_v24  ;;  %v457_v62 = vld [vmem:[%s873_s1 + $0x90] sm:$0xff]  ;;  %v460_v22 = vld [vmem:[%s872_s0 + $0xa0] sm:$0xff] }
  0x13   :  { %v210_v38 = vadd.f32 %v209_v28, %v207_v27  ;;  %v645_v41 = vmul.f32 %v143_v32, %v139_v25  ;;  %v224_v43 = vadd.f32 %v223_v34, %v216_v33  ;;  %v243_v44 = vsub.f32 %v448_v29, %v449_v30  ;;  %v461_v23 = vld [vmem:[%s873_s1 + $0xa0] sm:$0xff]  ;;  %v462_v33 = vld [vmem:[%s872_s0 + $0xa8] sm:$0xff] }
  0x14   :  { %481 = vrcp.f32 %v122_v31  ;;  %v230_v48 = vmul.f32 %v229_v39, %v229_v39  ;;  %v237_v50 = vmul.f32 %v236_v40, %v236_v40  ;;  %v250_v52 = vsub.f32 %v450_v35, %v451_v36  ;;  %v388_v28 = vld [vmem:[%s871_s2 + $0x3] sm:$0x1]  ;;  %v463_v34 = vld [vmem:[%s873_s1 + $0xa8] sm:$0xff] }
  0x15   :  { %v357_v49 = vsel %vm53_vm0, %v210_v38, 0.0  ;;  %v149_v53 = vsub.f32 %v148_v37, %v645_v41  ;;  %v244_v58 = vmul.f32 %v243_v44, %v243_v44  ;;  %v257_v59 = vsub.f32 %v452_v45, %v453_v46  ;;  %v464_v46 = vld [vmem:[%s872_s0 + $0xb0] sm:$0xff] }
  0x16   :  { %v389_v54 = vrot.slane %v357_v49, 4  ;;  %v231_v57 = vadd.f32 %v230_v48, %v224_v43  ;;  %v251_v0 = vmul.f32 %v250_v52, %v250_v52  ;;  %v264_v6 = vsub.f32 %v454_v55, %v455_v56 }
  0x17   :  { %483 = vrcp.f32 %v149_v53  ;;  %v258_v18 = vmul.f32 %v257_v59, %v257_v59  ;;  %v271_v19 = vsub.f32 %v456_v61, %v457_v62  ;;  %v278_v26 = vsub.f32 %v458_v9, %v459_v13  ;;  %v470_v13 = vld [vmem:[%s872_s0 + $0xc8] sm:$0xff] }
  0x18   :  { %v390_v60 = vadd.f32 %v389_v54, %v357_v49  ;;  %v238_v63 = vadd.f32 %v237_v50, %v231_v57  ;;  %v265_v25 = vmul.f32 %v264_v6, %v264_v6  ;;  %v285_v32 = vsub.f32 %v460_v22, %v461_v23  ;;  %v465_v49 = vld [vmem:[%s873_s1 + $0xb0] sm:$0xff]  ;;  %v466_v57 = vld [vmem:[%s872_s0 + $0xb8] sm:$0xff] }
  0x19   :  { %v272_v30 = vmul.f32 %v271_v19, %v271_v19  ;;  %v279_v38 = vmul.f32 %v278_v26, %v278_v26  ;;  %v292_v43 = vsub.f32 %v462_v33, %v463_v34  ;;  %v299_v56 = vsub.f32 %v464_v46, %v465_v49  ;;  %v438_v19 = vld [vmem:[%s873_s1 + $0x40] sm:$0xff] }
  0x1a   :  { %v391_v8 = vrot.slane %v390_v60, 2  ;;  %v245_v14 = vadd.f32 %v244_v58, %v238_v63  ;;  %v286_v45 = vmul.f32 %v285_v32, %v285_v32  ;;  %v467_v58 = vld [vmem:[%s873_s1 + $0xb8] sm:$0xff]  ;;  %v477_v33 = vld [vmem:[%s873_s1 + $0xe0] sm:$0xff]  ;;  %vm52_vm2 = vcmp.gt.f32.partialorder %v587_v42, 0.0 }
  0x1b   :  { %v293_v55 = vmul.f32 %v292_v43, %v292_v43  ;;  %v306_v61 = vsub.f32 %v466_v57, %v467_v58  ;;  %v300_v6 = vmul.f32 %v299_v56, %v299_v56  ;;  %v370_v42 = vld [vmem:[%s871_s2 + $0x1] sm:$0x1] }
  0x1c   :  { %v392_v20 = vadd.f32 %v391_v8, %v390_v60  ;;  %v252_v24 = vadd.f32 %v251_v0, %v245_v14  ;;  %v469_v8 = vld [vmem:[%s873_s1 + $0xc0] sm:$0xff]  ;;  %v435_v14 = vld [vmem:[%s873_s1 + $0x28] sm:$0xff] }
  0x1d   :  { %v307_v23 = vmul.f32 %v306_v61, %v306_v61 }
  0x1e   :  { %v393_v27 = vrot.slane %v392_v20, 1  ;;  %v259_v29 = vadd.f32 %v258_v18, %v252_v24  ;;  %v436_v18 = vld [vmem:[%s873_s1 + $0x30] sm:$0xff] }
  0x20   :  { %v394_v35 = vadd.f32 %v393_v27, %v392_v20  ;;  %v266_v37 = vadd.f32 %v265_v25, %v259_v29  ;;  %v472_v29 = vld [vmem:[%s872_s0 + $0xd0] sm:$0xff] }
  0x21   :  { %v482_v36 = vpop.eup %481 }
  0x22   :  { %v124_v39 = vmul.f32 %v482_v36, %v122_v31  ;;  %v395_v40 = vadd.f32 %v394_v35, %v388_v28  ;;  %v273_v44 = vadd.f32 %v272_v30, %v266_v37 }
  0x24   :  { %v125_v48 = vsub.f32 2.0, %v124_v39  ;;  %396 = vst [vmem:[%s871_s2 + $0x3] sm:$0x1] %v395_v40  ;;  %v484_v50 = vpop.eup %483  ;;  %v280_v52 = vadd.f32 %v279_v38, %v273_v44  ;;  %v478_v38 = vld [vmem:[%s872_s0 + $0xe8] sm:$0xff] }
  0x25   :  { %v151_v54 = vmul.f32 %v484_v50, %v149_v53  ;;  %v468_v53 = vld [vmem:[%s872_s0 + $0xc0] sm:$0xff]  ;;  %v479_v39 = vld [vmem:[%s873_s1 + $0xe8] sm:$0xff] }
  0x26   :  { %v126_v31 = vmul.f32 %v482_v36, %v125_v48  ;;  %v287_v59 = vadd.f32 %v286_v45, %v280_v52  ;;  %v313_v24 = vsub.f32 %v468_v53, %v469_v8  ;;  %v348_v52 = vsub.f32 %v478_v38, %v479_v39 }
  0x27   :  { %v152_v60 = vsub.f32 2.0, %v151_v54 }
  0x28   :  { %v127_v62 = vmul.f32 %v126_v31, %v621_v17  ;;  %v294_v0 = vadd.f32 %v293_v55, %v287_v59  ;;  %v471_v17 = vld [vmem:[%s873_s1 + $0xc8] sm:$0xff]  ;;  %v314_v30 = vmul.f32 %v313_v24, %v313_v24  ;;  %v361_v24 = vld [vmem:[%s871_s2] sm:$0x1] }
  0x29   :  { %v153_v63 = vmul.f32 %v484_v50, %v152_v60  ;;  %v320_v28 = vsub.f32 %v470_v13, %v471_v17 }
  0x2a   :  { %v301_v22 = vadd.f32 %v300_v6, %v294_v0 }
  0x2b   :  { %v154_v9 = vmul.f32 %v153_v63, %v645_v41  ;;  %v437_v41 = vld [vmem:[%s873_s1 + $0x38] sm:$0xff]  ;;  %v321_v36 = vmul.f32 %v320_v28, %v320_v28 }
  0x2d   :  { %vm730_vm1 = vcmp.gt.f32.partialorder %v154_v9, %v127_v62 }
  0x2e   :  { %v157_v25 = vsel %vm730_vm1, %v535_v5, %v515_v1  ;;  %v158_v26 = vsel %vm730_vm1, %v541_v7, %v520_v2  ;;  %v746_v27 = vsel %vm730_vm1, %v565_v15, %v525_v3  ;;  %v473_v1 = vld [vmem:[%s873_s1 + $0xd0] sm:$0xff]  ;;  %v758_v2 = vsel %vm730_vm1, %v577_v21, %v530_v4 }
  0x2f   :  { %v162_v3 = vsel %vm730_vm1, %v435_v14, %v548_v10  ;;  %v163_v5 = vsel %vm730_vm1, %v436_v18, %v553_v11  ;;  %v769_v7 = vsel %vm730_vm1, %v437_v41, %v558_v12  ;;  %v774_v15 = vsel %vm730_vm1, %v438_v19, %v570_v16  ;;  %v474_v10 = vld [vmem:[%s872_s0 + $0xd8] sm:$0xff]  ;;  %v476_v16 = vld [vmem:[%s872_s0 + $0xe0] sm:$0xff] }
  0x30   :  { %v166_v4 = vsub.f32 %v157_v25, %v162_v3  ;;  %v168_v21 = vsub.f32 %v158_v26, %v163_v5  ;;  %485 = vrsqrt.f32 %v746_v27  ;;  %v475_v11 = vld [vmem:[%s873_s1 + $0xd8] sm:$0xff]  ;;  %v308_v12 = vadd.f32 %v307_v23, %v301_v22 }
  0x31   :  { %487 = vrsqrt.f32 %v769_v7  ;;  %v327_v32 = vsub.f32 %v472_v29, %v473_v1  ;;  %v334_v37 = vsub.f32 %v474_v10, %v475_v11  ;;  %v341_v43 = vsub.f32 %v476_v16, %v477_v33 }
  0x32   :  { %v167_v34 = vmul.f32 %v166_v4, %v166_v4  ;;  %v169_v35 = vmul.f32 %v168_v21, %v168_v21  ;;  %489 = vrsqrt.f32 %v758_v2  ;;  %v156_v44 = vsel %vm730_vm1, %v154_v9, %v127_v62 }
  0x33   :  { %491 = vrsqrt.f32 %v774_v15  ;;  %v161_v45 = vsel %vm730_vm1, %v597_v51, %v592_v47  ;;  %v315_v46 = vadd.f32 %v314_v30, %v308_v12  ;;  %v328_v49 = vmul.f32 %v327_v32, %v327_v32 }
  0x34   :  { %v170_v40 = vadd.f32 %v169_v35, %v167_v34  ;;  %v204_v50 = vsub.f32 %v161_v45, %v156_v44  ;;  %v335_v55 = vmul.f32 %v334_v37, %v334_v37  ;;  %v342_v59 = vmul.f32 %v341_v43, %v341_v43 }
  0x35   :  { %v322_v54 = vadd.f32 %v321_v36, %v315_v46  ;;  %vm173_vm3 = vcmp.eq.f32.partialorder %v746_v27, inf  ;;  %v349_v47 = vmul.f32 %v348_v52, %v348_v52  ;;  %vm175_vm4 = vcmp.eq.f32.partialorder %v746_v27, 0.0  ;;  %v379_v36 = vld [vmem:[%s871_s2 + $0x2] sm:$0x1] }
  0x36   :  { %v351_v48 = vsel %vm52_vm2, %v170_v40, 0.0  ;;  %v205_v56 = vmul.f32 %v204_v50, %v204_v50  ;;  %v176_v63 = vand.u32 2147483648, %v746_v27  ;;  %vm180_vm5 = vcmp.eq.f32.partialorder %v769_v7, inf }
  0x37   :  { %v362_v31 = vrot.slane %v351_v48, 4  ;;  %v329_v58 = vadd.f32 %v328_v49, %v322_v54  ;;  %vm182_vm6 = vcmp.eq.f32.partialorder %v769_v7, 0.0  ;;  %v183_v0 = vand.u32 2147483648, %v769_v7  ;;  %v397_v49 = vld [vmem:[%s871_s2 + $0x4] sm:$0x1] }
  0x38   :  { %v355_v60 = vsel %vm52_vm2, %v205_v56, 0.0  ;;  %vm189_vm7 = vcmp.eq.f32.partialorder %v758_v2, inf  ;;  %vm191_vm8 = vcmp.eq.f32.partialorder %v758_v2, 0.0  ;;  %v192_v14 = vand.u32 2147483648, %v758_v2 }
  0x39   :  { %v363_v57 = vadd.f32 %v362_v31, %v351_v48  ;;  %v380_v61 = vrot.slane %v355_v60, 4  ;;  %v336_v62 = vadd.f32 %v335_v55, %v329_v58  ;;  %vm196_vm9 = vcmp.eq.f32.partialorder %v774_v15, inf }
  0x3a   :  { %vm198_vm10 = vcmp.eq.f32.partialorder %v774_v15, 0.0  ;;  %v199_v28 = vand.u32 2147483648, %v774_v15 }
  0x3b   :  { %v364_v51 = vrot.slane %v363_v57, 2  ;;  %v381_v8 = vadd.f32 %v380_v61, %v355_v60  ;;  %v343_v9 = vadd.f32 %v342_v59, %v336_v62 }
  0x3d   :  { %v486_v6 = vpop.eup %485  ;;  %v365_v53 = vadd.f32 %v364_v51, %v363_v57  ;;  %v382_v20 = vrot.slane %v381_v8, 2  ;;  %v350_v22 = vadd.f32 %v349_v47, %v343_v9 }
  0x3e   :  { %v488_v13 = vpop.eup %487  ;;  %v172_v17 = vmul.f32 %v486_v6, %v746_v27 }
  0x3f   :  { %v490_v18 = vpop.eup %489  ;;  %v366_v41 = vrot.slane %v365_v53, 1  ;;  %v179_v19 = vmul.f32 %v488_v13, %v769_v7  ;;  %v383_v10 = vadd.f32 %v382_v20, %v381_v8  ;;  %v359_v11 = vsel %vm52_vm2, %v350_v22, 0.0 }
  0x40   :  { %v492_v23 = vpop.eup %491  ;;  %v174_v25 = vsel %vm173_vm3, %v746_v27, %v172_v17  ;;  %v188_v26 = vmul.f32 %v490_v18, %v758_v2  ;;  %v398_v33 = vrot.slane %v359_v11, 4 }
  0x41   :  { %v367_v29 = vadd.f32 %v366_v41, %v365_v53  ;;  %v177_v1 = vsel %vm175_vm4, %v176_v63, %v174_v25  ;;  %v181_v3 = vsel %vm180_vm5, %v769_v7, %v179_v19  ;;  %v195_v5 = vmul.f32 %v492_v23, %v774_v15 }
  0x42   :  { %v184_v4 = vsel %vm182_vm6, %v183_v0, %v181_v3  ;;  %v190_v21 = vsel %vm189_vm7, %v758_v2, %v188_v26  ;;  %v384_v7 = vrot.slane %v383_v10, 1  ;;  %v399_v2 = vadd.f32 %v398_v33, %v359_v11 }
  0x43   :  { %v368_v12 = vadd.f32 %v367_v29, %v361_v24  ;;  %v185_v27 = vsub.f32 %v177_v1, %v184_v4  ;;  %v193_v30 = vsel %vm191_vm8, %v192_v14, %v190_v21  ;;  %v197_v32 = vsel %vm196_vm9, %v774_v15, %v195_v5 }
  0x44   :  { %v200_v16 = vsel %vm198_vm10, %v199_v28, %v197_v32  ;;  %v385_v37 = vadd.f32 %v384_v7, %v383_v10  ;;  %v400_v40 = vrot.slane %v399_v2, 2 }
  0x45   :  { %369 = vst [vmem:[%s871_s2] sm:$0x1] %v368_v12  ;;  %v186_v34 = vmul.f32 %v185_v27, %v185_v27  ;;  %v201_v35 = vsub.f32 %v193_v30, %v200_v16 }
  0x46   :  { %v386_v39 = vadd.f32 %v385_v37, %v379_v36  ;;  %v401_v15 = vadd.f32 %v400_v40, %v399_v2 }
  0x47   :  { %v202_v38 = vmul.f32 %v201_v35, %v201_v35 }
  0x48   :  { %387 = vst [vmem:[%s871_s2 + $0x2] sm:$0x1] %v386_v39  ;;  %v402_v46 = vrot.slane %v401_v15, 1 }
  0x49   :  { %v203_v43 = vadd.f32 %v202_v38, %v186_v34 }
  0x4a   :  { %v403_v50 = vadd.f32 %v402_v46, %v401_v15 }
  0x4b   :  { %v353_v44 = vsel %vm52_vm2, %v203_v43, 0.0 }
  0x4c   :  { %v371_v45 = vrot.slane %v353_v44, 4  ;;  %v404_v31 = vadd.f32 %v403_v50, %v397_v49 }
  0x4e   :  { %v372_v48 = vadd.f32 %v371_v45, %v353_v44  ;;  %405 = vst [vmem:[%s871_s2 + $0x4] sm:$0x1] %v404_v31 }
  0x50   :  { %v373_v52 = vrot.slane %v372_v48, 2 }
  0x52   :  { %v374_v54 = vadd.f32 %v373_v52, %v372_v48 }
  0x54   :  { %v375_v55 = vrot.slane %v374_v54, 1 }
  0x56   :  { %v376_v56 = vadd.f32 %v375_v55, %v374_v54 }
  0x58   :  { %v377_v57 = vadd.f32 %v376_v56, %v370_v42 }
  0x5a   :  { %378 = vst [vmem:[%s871_s2 + $0x1] sm:$0x1] %v377_v57 }

</bundles_post_ra>
